<compile_context>
chip_gen: v7x
topology: tpu7x:2x2x1
jax: 0.10.0
libtpu: 0.0.40
codegen_flags: <defaults>
</compile_context>

<pallas_src>
import functools

import jax
import jax.numpy as jnp
import numpy as np
from jax.experimental import pallas as pl
from jax.experimental.pallas import tpu as pltpu


def _round_up(x, m):
    return (x + m - 1) // m * m


def _cdiv(a, b):
    return (a + b - 1) // b


# ---------------------------------------------------------------------------
# Kernel
# ---------------------------------------------------------------------------
def _fused_kernel(dna_ref, prot_ref, wa_ref, ba_ref, wb_ref, bb_ref, *out_refs):
    """out_a = prot @ Wa + ba ; out_b = dna @ Wb + bb (2 MXU GEMMs)."""
    f32 = jnp.float32
    wdt = wa_ref.dtype
    prot = prot_ref[...].astype(wdt)
    dna = dna_ref[...].astype(wdt)

    out_a = jnp.dot(prot, wa_ref[...], preferred_element_type=f32) + ba_ref[...]
    out_b = jnp.dot(dna, wb_ref[...], preferred_element_type=f32) + bb_ref[...]

    if len(out_refs) == 1:
        # H multiple of 128: packed (tb, 2H) tile, both stores lane-aligned.
        o, = out_refs
        H = wa_ref.shape[1]
        o[:, :H] = out_a.astype(o.dtype)
        o[:, H:] = out_b.astype(o.dtype)
    else:
        # Lane-dense fallback for H % 128 != 0: two separate outputs so every
        # store starts at lane 0 (no masked vst from a mid-tile lane offset).
        oa, ob = out_refs
        oa[...] = out_a.astype(oa.dtype)
        ob[...] = out_b.astype(ob.dtype)


# ---------------------------------------------------------------------------
# Parameter prep (done ONCE, outside the per-step forward path)
# ---------------------------------------------------------------------------
def prepare_fused_params(params, weight_dtype=jnp.float32):
    """Fold the purely linear module into two weight/bias pairs.

    Fusion is performed in f32; the fused weights may then be stored in bf16
    for the MXU / HBM-bandwidth win.  Biases stay f32 (tiny, added post-GEMM).
    """
    f32 = jnp.float32
    H = params["w_out_a"].shape[0]

    wv_a = params["w_in_a"][:, 2 * H:].astype(f32)   # V third only
    bv_a = params["b_in_a"][:, 2 * H:].astype(f32)
    wv_b = params["w_in_b"][:, 2 * H:].astype(f32)
    bv_b = params["b_in_b"][:, 2 * H:].astype(f32)
    wo_a, bo_a = params["w_out_a"].astype(f32), params["b_out_a"].astype(f32)
    wo_b, bo_b = params["w_out_b"].astype(f32), params["b_out_b"].astype(f32)
    w_dna, b_dna = params["w_dna"].astype(f32), params["b_dna"].astype(f32)

    wa = wv_a @ wo_a                               # (H, H)
    ba = bv_a @ wo_a + bo_a                        # (1, H)
    wb = w_dna @ (wv_b @ wo_b)                     # (Dd, H)
    bb = (b_dna @ wv_b + bv_b) @ wo_b + bo_b       # (1, H)

    return {"wa": wa.astype(weight_dtype), "ba": ba,
            "wb": wb.astype(weight_dtype), "bb": bb}


# ---------------------------------------------------------------------------
# Forward
# ---------------------------------------------------------------------------
@functools.partial(jax.jit, static_argnames=("tile_b", "out_dtype"))
def bi_cross_attention(dna_emb, protein_emb, fused, *, tile_b=1024,
                       out_dtype=jnp.float32):
    """Forward pass.  dna_emb: (B, Dd), protein_emb: (B, H) -> (B, 2H)."""
    B, Dd = dna_emb.shape
    H = protein_emb.shape[1]
    wa, ba, wb, bb = fused["wa"], fused["ba"], fused["wb"], fused["bb"]
    assert wa.shape == (H, H) and wb.shape == (Dd, H)

    # Sublane multiple: 16 if any operand is bf16, else 8.
    bf16 = jnp.dtype(jnp.bfloat16)
    use_bf16 = any(jnp.dtype(d) == bf16 for d in
                   (wa.dtype, dna_emb.dtype, protein_emb.dtype, jnp.dtype(out_dtype)))
    sub = 16 if use_bf16 else 8

    # Batch tiling: as large as the batch allows (per-step overhead ~0.35us
    # dominates small tiles), but always >= 2 grid steps when possible so the
    # "parallel" axis can shard across both v7x TensorCores.
    b_pad = _round_up(B, sub)
    tb_req = max(sub, min(_round_up(tile_b, sub), b_pad))
    n_steps = _cdiv(b_pad, tb_req)
    if b_pad >= 2 * sub:
        n_steps = max(n_steps, 2)
    tb = _round_up(_cdiv(b_pad, n_steps), sub)
    Bp = _round_up(B, tb)
    if Bp != B:
        pad = Bp - B
        dna_emb = jnp.pad(dna_emb, ((0, pad), (0, 0)))
        protein_emb = jnp.pad(protein_emb, ((0, pad), (0, 0)))

    grid = (Bp // tb,)
    packed = (H % 128 == 0)

    def batch_spec(cols):
        return pl.BlockSpec((tb, cols), lambda i: (i, 0))

    def const_spec(arr):
        # Constant index_map: DMA'd once, VMEM-resident across the batch grid.
        # Single-buffered since the block never changes.
        return pl.BlockSpec(arr.shape, lambda i: (0, 0),
                            pipeline_mode=pl.Buffered(1))

    in_specs = [batch_spec(Dd), batch_spec(H),
                const_spec(wa), const_spec(ba), const_spec(wb), const_spec(bb)]

    if packed:
        out_shape = jax.ShapeDtypeStruct((Bp, 2 * H), out_dtype)
        out_specs = pl.BlockSpec((tb, 2 * H), lambda i: (i, 0))
    else:
        out_shape = (jax.ShapeDtypeStruct((Bp, H), out_dtype),
                     jax.ShapeDtypeStruct((Bp, H), out_dtype))
        out_specs = (pl.BlockSpec((tb, H), lambda i: (i, 0)),
                     pl.BlockSpec((tb, H), lambda i: (i, 0)))

    # Explicit VMEM budget: resident weights (single-buffered) + double-buffered
    # activation/output tiles + headroom (v5e scoped default is only 16 MiB).
    w_bytes = (wa.size * wa.dtype.itemsize + wb.size * wb.dtype.itemsize
               + (ba.size + bb.size) * 4)
    a_bytes = 2 * tb * (Dd * dna_emb.dtype.itemsize + H * protein_emb.dtype.itemsize)
    o_bytes = 2 * tb * 2 * H * jnp.dtype(out_dtype).itemsize
    vmem_limit = int(min(max(2 * (w_bytes + a_bytes + o_bytes) + (4 << 20), 16 << 20),
                         48 << 20))

    out = pl.pallas_call(
        _fused_kernel,
        out_shape=out_shape,
        grid=grid,
        in_specs=in_specs,
        out_specs=out_specs,
        compiler_params=pltpu.CompilerParams(
            dimension_semantics=("parallel",),   # batch axis -> v7x megacore
            vmem_limit_bytes=vmem_limit),
    )(dna_emb, protein_emb, wa, ba, wb, bb)

    if packed:
        return out[:B]
    out_a, out_b = out
    return jnp.concatenate([out_a[:B], out_b[:B]], axis=-1)


# ---------------------------------------------------------------------------
# Synthetic parameters + pure-JAX reference (full MHA path, no simplification)
# ---------------------------------------------------------------------------
def init_params(key, dna_dim, hidden_dim):
    """Deterministic synthetic parameters (shapes follow the PyTorch module)."""
    ks = jax.random.split(key, 12)

    def u(k, shape, scale=0.05):
        return jax.random.uniform(k, shape, jnp.float32, -scale, scale)

    H = hidden_dim
    return {
        # nn.Linear(dna_dim, hidden_dim): weight stored transposed (in, out)
        "w_dna": u(ks[0], (dna_dim, H)),
        "b_dna": u(ks[1], (1, H)),
        # cross_attn_dna: in_proj (H, 3H) transposed, bias (1, 3H), out_proj (H, H) transposed
        "w_in_a": u(ks[2], (H, 3 * H)),
        "b_in_a": u(ks[3], (1, 3 * H)),
        "w_out_a": u(ks[4], (H, H)),
        "b_out_a": u(ks[5], (1, H)),
        # cross_attn_protein
        "w_in_b": u(ks[6], (H, 3 * H)),
        "b_in_b": u(ks[7], (1, 3 * H)),
        "w_out_b": u(ks[8], (H, H)),
        "b_out_b": u(ks[9], (1, H)),
    }


def reference(dna_emb, protein_emb, params, num_heads):
    """Matches torch.nn.MultiheadAttention semantics (full q/k/v + softmax)."""
    H = protein_emb.shape[1]
    hd = H // num_heads
    B = dna_emb.shape[0]
    dna_p = dna_emb @ params["w_dna"] + params["b_dna"]

    def mha(q_in, kv_in, win, b_in, wo, bo):
        q = q_in @ win[:, :H] + b_in[:, :H]
        k = kv_in @ win[:, H:2 * H] + b_in[:, H:2 * H]
        v = kv_in @ win[:, 2 * H:] + b_in[:, 2 * H:]
        qh = q.reshape(B, num_heads, hd)
        kh = k.reshape(B, num_heads, hd)
        vh = v.reshape(B, num_heads, hd)
        scores = jnp.sum(qh * kh, axis=-1, keepdims=True) / jnp.sqrt(jnp.float32(hd))
        w = jax.nn.softmax(scores, axis=-1)  # softmax over a single key -> ones
        attn = (w * vh).reshape(B, H)
        return attn @ wo + bo

    out_a = mha(dna_p, protein_emb, params["w_in_a"], params["b_in_a"],
                params["w_out_a"], params["b_out_a"])
    out_b = mha(protein_emb, dna_p, params["w_in_b"], params["b_in_b"],
                params["w_out_b"], params["b_out_b"])
    return jnp.concatenate([out_a, out_b], axis=-1)


if __name__ == "__main__":
    # --- Test 1: lane-aligned hidden (H % 128 == 0), f32 fused weights ------
    B, DNA_DIM, HIDDEN_DIM, NUM_HEADS = 16, 64, 128, 8
    k_dna, k_prot, k_par = jax.random.split(jax.random.PRNGKey(0), 3)
    dna_emb = jax.random.normal(k_dna, (B, DNA_DIM), jnp.float32)
    protein_emb = jax.random.normal(k_prot, (B, HIDDEN_DIM), jnp.float32)
    params = init_params(k_par, DNA_DIM, HIDDEN_DIM)
    fused_f32 = prepare_fused_params(params, weight_dtype=jnp.float32)

    out = jax.block_until_ready(bi_cross_attention(dna_emb, protein_emb, fused_f32))
    ref = reference(dna_emb, protein_emb, params, NUM_HEADS)
    assert out.shape == (B, 2 * HIDDEN_DIM), out.shape
    np.testing.assert_allclose(np.asarray(out), np.asarray(ref), rtol=2e-5, atol=2e-5)

    # --- Test 2: H % 128 != 0 (split lane-dense outputs) + bf16 fused weights
    B2, DNA2, HID2, NH2 = 24, 48, 96, 8
    k_dna2, k_prot2, k_par2 = jax.random.split(jax.random.PRNGKey(1), 3)
    dna2 = jax.random.normal(k_dna2, (B2, DNA2), jnp.float32)
    prot2 = jax.random.normal(k_prot2, (B2, HID2), jnp.float32)
    params2 = init_params(k_par2, DNA2, HID2)
    fused_bf16 = prepare_fused_params(params2, weight_dtype=jnp.bfloat16)

    out2 = jax.block_until_ready(bi_cross_attention(dna2, prot2, fused_bf16))
    ref2 = reference(dna2, prot2, params2, NH2)
    assert out2.shape == (B2, 2 * HID2), out2.shape
    np.testing.assert_allclose(np.asarray(out2), np.asarray(ref2), rtol=2e-2, atol=2e-2)

    print("KERNEL_OK")
</pallas_src>

<mosaic_0001>
module attributes {stable_mosaic.version = 11 : i64} {
  func.func @_fused_kernel(%arg0: i32, %arg1: memref<8x64xf32, #tpu.memory_space<vmem>>, %arg2: memref<8x128xf32, #tpu.memory_space<vmem>>, %arg3: memref<128x128xf32, #tpu.memory_space<vmem>>, %arg4: memref<1x128xf32, #tpu.memory_space<vmem>>, %arg5: memref<64x128xf32, #tpu.memory_space<vmem>>, %arg6: memref<1x128xf32, #tpu.memory_space<vmem>>, %arg7: memref<8x256xf32, #tpu.memory_space<vmem>>) attributes {dimension_semantics = [#tpu.dimension_semantics<parallel>], iteration_bounds = array<i64: 2>, scalar_prefetch = 0 : i64, scratch_operands = 0 : i64, tpu.core_type = #tpu.core_type<tc>, window_params = [{transform_indices = @transform_0, window_bounds = array<i64: 8, 64>}, {transform_indices = @transform_1, window_bounds = array<i64: 8, 128>}, {pipeline_mode = #tpu.pipeline_mode<synchronous>, transform_indices = @transform_2, window_bounds = array<i64: 128, 128>}, {pipeline_mode = #tpu.pipeline_mode<synchronous>, transform_indices = @transform_3, window_bounds = array<i64: 1, 128>}, {pipeline_mode = #tpu.pipeline_mode<synchronous>, transform_indices = @transform_4, window_bounds = array<i64: 64, 128>}, {pipeline_mode = #tpu.pipeline_mode<synchronous>, transform_indices = @transform_5, window_bounds = array<i64: 1, 128>}, {transform_indices = @transform_6, window_bounds = array<i64: 8, 256>}]} {
    %c0 = arith.constant 0 : index
    %c0_0 = arith.constant 0 : index
    %0 = vector.load %arg2[%c0, %c0_0] : memref<8x128xf32, #tpu.memory_space<vmem>>, vector<8x128xf32>
    %c0_1 = arith.constant 0 : index
    %c0_2 = arith.constant 0 : index
    %1 = vector.load %arg1[%c0_1, %c0_2] : memref<8x64xf32, #tpu.memory_space<vmem>>, vector<8x64xf32>
    %c0_3 = arith.constant 0 : index
    %c0_4 = arith.constant 0 : index
    %2 = vector.load %arg3[%c0_3, %c0_4] : memref<128x128xf32, #tpu.memory_space<vmem>>, vector<128x128xf32>
    %cst = arith.constant dense<0.000000e+00> : vector<8x128xf32>
    %3 = tpu.matmul %0, %2, %cst {dimension_numbers = #tpu.dot_dimension_numbers<[1], [0], [0], [1], [0, 0, 1, 1], [], []>} : vector<8x128xf32>, vector<128x128xf32>, vector<8x128xf32> -> vector<8x128xf32>
    %c0_5 = arith.constant 0 : index
    %c0_6 = arith.constant 0 : index
    %4 = vector.load %arg4[%c0_5, %c0_6] : memref<1x128xf32, #tpu.memory_space<vmem>>, vector<1x128xf32>
    %5 = vector.broadcast %4 : vector<1x128xf32> to vector<8x128xf32>
    %6 = arith.addf %3, %5 : vector<8x128xf32>
    %c0_7 = arith.constant 0 : index
    %c0_8 = arith.constant 0 : index
    %7 = vector.load %arg5[%c0_7, %c0_8] : memref<64x128xf32, #tpu.memory_space<vmem>>, vector<64x128xf32>
    %cst_9 = arith.constant dense<0.000000e+00> : vector<8x128xf32>
    %8 = tpu.matmul %1, %7, %cst_9 {dimension_numbers = #tpu.dot_dimension_numbers<[1], [0], [0], [1], [0, 0, 1, 1], [], []>} : vector<8x64xf32>, vector<64x128xf32>, vector<8x128xf32> -> vector<8x128xf32>
    %c0_10 = arith.constant 0 : index
    %c0_11 = arith.constant 0 : index
    %9 = vector.load %arg6[%c0_10, %c0_11] : memref<1x128xf32, #tpu.memory_space<vmem>>, vector<1x128xf32>
    %10 = vector.broadcast %9 : vector<1x128xf32> to vector<8x128xf32>
    %11 = arith.addf %8, %10 : vector<8x128xf32>
    %c0_12 = arith.constant 0 : index
    %c0_13 = arith.constant 0 : index
    %12 = vector.load %arg7[%c0_12, %c0_13] : memref<8x256xf32, #tpu.memory_space<vmem>>, vector<8x128xf32>
    tpu.vector_store %arg7[%c0_12, %c0_13], %6 {strides = array<i32>} : memref<8x256xf32, #tpu.memory_space<vmem>>, vector<8x128xf32>,
    %c0_14 = arith.constant 0 : index
    %c128 = arith.constant 128 : index
    %13 = vector.load %arg7[%c0_14, %c128] : memref<8x256xf32, #tpu.memory_space<vmem>>, vector<8x128xf32>
    tpu.vector_store %arg7[%c0_14, %c128], %11 {strides = array<i32>} : memref<8x256xf32, #tpu.memory_space<vmem>>, vector<8x128xf32>,
    return
  }
  func.func @transform_0(%arg0: i32) -> (i32, i32) {
    %c0_i32 = arith.constant 0 : i32
    %c0_i32_0 = arith.constant 0 : i32
    return %arg0, %c0_i32 : i32, i32
  }
  func.func @transform_1(%arg0: i32) -> (i32, i32) {
    %c0_i32 = arith.constant 0 : i32
    %c0_i32_0 = arith.constant 0 : i32
    return %arg0, %c0_i32 : i32, i32
  }
  func.func @transform_2(%arg0: i32) -> (i32, i32) {
    %c0_i32 = arith.constant 0 : i32
    %c0_i32_0 = arith.constant 0 : i32
    %c0_i32_1 = arith.constant 0 : i32
    return %c0_i32, %c0_i32_0 : i32, i32
  }
  func.func @transform_3(%arg0: i32) -> (i32, i32) {
    %c0_i32 = arith.constant 0 : i32
    %c0_i32_0 = arith.constant 0 : i32
    %c0_i32_1 = arith.constant 0 : i32
    return %c0_i32, %c0_i32_0 : i32, i32
  }
  func.func @transform_4(%arg0: i32) -> (i32, i32) {
    %c0_i32 = arith.constant 0 : i32
    %c0_i32_0 = arith.constant 0 : i32
    %c0_i32_1 = arith.constant 0 : i32
    return %c0_i32, %c0_i32_0 : i32, i32
  }
  func.func @transform_5(%arg0: i32) -> (i32, i32) {
    %c0_i32 = arith.constant 0 : i32
    %c0_i32_0 = arith.constant 0 : i32
    %c0_i32_1 = arith.constant 0 : i32
    return %c0_i32, %c0_i32_0 : i32, i32
  }
  func.func @transform_6(%arg0: i32) -> (i32, i32) {
    %c0_i32 = arith.constant 0 : i32
    %c0_i32_0 = arith.constant 0 : i32
    return %arg0, %c0_i32 : i32, i32
  }
}

</mosaic_0001>

<bundles_post_ra>
// kernel: bi_cross_attention.1
= control target key start
LH: loop header
LB: loop body
LE: loop exit
PB: predicated region body
PF: predicated region fallthrough
CT: control target
= control target key end

     0   :  { %s1398_s0 = inlined_call_operand.hbm [shape: f32[16,64], index: 0, kind: input, shape index: {}]   ;;  %s1399_s1 = inlined_call_operand.hbm [shape: f32[16,128], index: 1, kind: input, shape index: {}]   ;;  %s1400_s2 = inlined_call_operand.hbm [shape: f32[128,128], index: 2, kind: input, shape index: {}]   ;;  %s1401_s3 = inlined_call_operand.vmem [shape: f32[1,128], index: 3, kind: input, shape index: {}]   ;;  %s1402_s4 = inlined_call_operand.hbm [shape: f32[64,128], index: 4, kind: input, shape index: {}]   ;;  %s1403_s5 = inlined_call_operand.vmem [shape: f32[1,128], index: 5, kind: input, shape index: {}]   ;;  %s1404_s6 = inlined_call_operand.hbm [shape: f32[16,256], index: 6, kind: output, shape index: {}]  }
   0x1   :  { %1409 = sst [smem:[#allocation17_spill]] %s1400_s2 }
   0x2   :  { %1410 = sst [smem:[#allocation18_spill]] %s1402_s4 }
   0x3   :  { %11 = vsyncpa [#allocation3], 0 }
   0x4   :  { %13 = vsyncpa [#allocation3 + $0x1], 0 }
   0x5   :  { %14 = vsyncpa [#allocation6], 0 }
   0x6   :  { %16 = vsyncpa [#allocation6 + $0x1], 0 }
   0x7   :  { %17 = vsyncpa [#allocation9], 0 }
   0x8   :  { %18 = vsyncpa [#allocation4], 0 }
   0x9   :  { %20 = vsyncpa [#allocation4 + $0x1], 0  ;;  %s1104_s21 = smov 0   ;;  %s1106_s22 = smov 0  }
   0xa   :  { %s1108_s23 = smov 0   ;;  %s1110_s24 = smov 0  }
   0xb LB: > { %s1125_s25 = sadd.s32 4294967295, %s1057_s24   ;;  %s646_s26 = sadd.s32 4294967294, %s1057_s24   ;;  %s1057_s24 = sphi %s1110_s24, %s1434_s24   ;;  %s1053_s23 = sphi %s1108_s23, %s1433_s23   ;;  %s1049_s22 = sphi %s1106_s22, %s1432_s22   ;;  %s1045_s21 = sphi %s1104_s21, %s1431_s21  }
   0xc   : > { %p46_p0 = scmp.ne.s32.totalorder %s1049_s22, %s1045_s21  ;;  %p1405_p1 = scmp.eq.s32.totalorder %s1125_s25, 0 }
   0xd   : > { %p186_p3 = scmp.eq.s32.totalorder %s646_s26, 1  ;;  %p647_p5 = scmp.ge.s32.totalorder %s1057_s24, 1 }
   0xe   : > { %p1134_p4 = por %p1405_p1, %p46_p0  ;;  %p193_p7 = scmp.lt.s32.totalorder %s1057_s24, 3 }
   0xf   : > { %p1139_p6 = por %p186_p3, %p46_p0  ;;  %s1059_s30 = smov [#allocation7]  }
  0x10   : > { %s1411_s27 = scalar_select %p1134_p4, 1, 0 }
  0x11   : > { %s1412_s28 = scalar_select %p1139_p6, 1, 0 }
  0x12   : > { %p1144_p8 = pnand %p647_p5, %p193_p7  ;;  %s205_s7 = sshll.u32 %s1059_s30, 4  ;;  %s1148_s7 = int_to_ptr.vmem [resolvable:$true] %s205_s7 }
  0x13   : > { %s1060_s9 = smov [#allocation8]   ;;  %s1415_s2 = sld [smem:[#allocation17_spill]] }
  0x14   : > { %s1413_s29 = scalar_select %p1144_p8, 1, 0 }
  0x15   : > { %p800_p9 = pneg %p1144_p8  ;;  %s221_s10 = sshll.u32 %s1060_s9, 4  ;;  %s1159_s10 = int_to_ptr.vmem [resolvable:$true] %s221_s10 }
  0x17   : > { %p1155_p11 = pnand %p800_p9, %p1405_p1 }
  0x19   : > { %s863_s13 = scalar_lea.hbm %s1415_s2, 2048  ;;  %p865_p13 = pneg %p1155_p11 }
  0x1a   : > { %p864_p12 = scmp.ne.s32.totalorder %s1415_s2, %s863_s13  ;;  %p870_p5 = scmp.lt.u32.totalorder %s863_s13, %s1415_s2 }
  0x1c   : > { %p866_p0 = pnand %p865_p13, %p864_p12 }
  0x1e   : > { %p867_p3 = pneg %p866_p0 }
  0x20   : > { %p872_p7 = pnand %p870_p5, %p867_p3 }
  0x22   : > { %875 = shalt.err (!%p872_p7)
}
  0x23   : > { %s876_s18 = scalar_lea.vmem %s1148_s7, 2048  ;;  %p884_p2 = scmp.lt.s32.totalorder %s1148_s7, %s1148_s7 }
  0x24   : > { %p877_p9 = scmp.ne.s32.totalorder %s1148_s7, %s876_s18  ;;  %p885_p12 = scmp.lt.s32.totalorder %s876_s18, %s876_s18 }
  0x26   : > { %p879_p10 = pnand %p877_p9, %p865_p13  ;;  %p886_p0 = por %p885_p12, %p884_p2 }
  0x28   : > { %p880_p1 = pneg %p879_p10 }
  0x2a   : > { %p887_p6 = pnand %p886_p0, %p880_p1 }
  0x2c   : > { %890 = shalt.err (!%p887_p6)
}
  0x2d   : > { %s1061_s19 = smov 128   ;;  %s1062_s20 = smov 8  }
  0x2e   : > { %803 = dma.hbm_to_vmem [thread:$0]  (!%p1155_p11), %s1415_s2, 2048, %s1148_s7, [#allocation6], %s1061_s19, %s1061_s19, %s1062_s20  }
  0x2f   : > { %s1416_s4 = sld [smem:[#allocation18_spill]] }
  0x35   : > { %s891_s12 = scalar_lea.hbm %s1416_s4, 1024 }
  0x36   : > { %p892_p2 = scmp.ne.s32.totalorder %s1416_s4, %s891_s12  ;;  %p898_p10 = scmp.lt.u32.totalorder %s891_s12, %s1416_s4 }
  0x38   : > { %p894_p1 = pnand %p892_p2, %p865_p13 }
  0x3a   : > { %p895_p6 = pneg %p894_p1 }
  0x3c   : > { %p900_p3 = pnand %p898_p10, %p895_p6 }
  0x3e   : > { %903 = shalt.err (!%p900_p3)
}
  0x3f   : > { %s904_s7 = scalar_lea.vmem %s1159_s10, 1024  ;;  %p912_p12 = scmp.lt.s32.totalorder %s1159_s10, %s1159_s10 }
  0x40   : > { %p905_p5 = scmp.ne.s32.totalorder %s1159_s10, %s904_s7  ;;  %p913_p0 = scmp.lt.s32.totalorder %s904_s7, %s904_s7 }
  0x42   : > { %p907_p7 = pnand %p905_p5, %p865_p13  ;;  %p914_p2 = por %p913_p0, %p912_p12 }
  0x44   : > { %p908_p9 = pneg %p907_p7 }
  0x46   : > { %p915_p1 = pnand %p914_p2, %p908_p9 }
  0x48   : > { %918 = shalt.err (!%p915_p1)
}
  0x49   : > { %806 = dma.hbm_to_vmem [thread:$0]  (!%p1155_p11), %s1416_s4, 1024, %s1159_s10, [#allocation9], %s1061_s19, %s1061_s19, %s1062_s20  }
  0x4a   : > { %s1214_s26 = sadd.s32 1, %s1057_s24   ;;  %s33_s8 = sadd.s32 1, %s1053_s23 }
  0x4b   : > { %s30_s30 = ssub.s32 %s1057_s24, %s1214_s26  ;;  %p40_p13 = scmp.ne.s32.totalorder %s1053_s23, %s1049_s22 }
  0x4c   : > { %p31_p6 = scmp.eq.s32.totalorder %s30_s30, 0  ;;  %p41_p10 = scmp.eq.s32.totalorder %s1057_s24, 0 }
  0x4d   : > { %p1417_p3 = scmp.eq.s32.totalorder %s1125_s25, 1  ;;  %p820_p7 = scmp.lt.s32.totalorder %s1057_s24, 2 }
  0x4e   : > { %s1230_s11 = scalar_select %p31_p6, %s1053_s23, %s33_s8  }
  0x4f   : > { %p1224_p5 = por %p1417_p3, %p40_p13  ;;  %p42_p9 = por %p41_p10, %p40_p13 }
  0x50   : > { %1419 = sst [smem:[#allocation16_spill]] %s1230_s11  ;;  %s238_s12 = sand.u32 1, %s1053_s23  }
  0x51   : > { %s1418_s9 = scalar_select %p1224_p5, 1, 0 }
  0x52   : > { %s1233_s10 = sshll.u32 %s238_s12, 3  ;;  %s652_s19 = sshll.u32 %s1057_s24, 7 }
  0x53   : > { %s1239_s14 = scalar_lea.hbm %s1398_s0, %s652_s19  ;;  %s242_s15 = scalar_lea.vmem [#allocation2], %s1233_s10 }
  0x54   : > { %s249_s16 = sshll.u32 %s242_s15, 4  ;;  %p1244_p11 = pnand %p820_p7, %p42_p9  ;;  %s1242_s16 = int_to_ptr.vmem [resolvable:$true] %s249_s16 }
  0x55   : > { %s1251_s8 = scalar_lea.hbm %s1399_s1, %s652_s19  ;;  %s256_s30 = sand.u32 1, %s1057_s24  }
  0x56   : > { %s239_s20 = scalar_lea.sflag [#allocation3], %s238_s12  ;;  %s919_s13 = scalar_lea.hbm %s1239_s14, 128 }
  0x57   : > { %p920_p12 = scmp.ne.s32.totalorder %s1239_s14, %s919_s13  ;;  %p921_p0 = pneg %p1244_p11 }
  0x58   : > { %s924_s4 = scalar_lea.hbm %s1398_s0, 256  ;;  %p925_p13 = scmp.lt.u32.totalorder %s1239_s14, %s1398_s0 }
  0x59   : > { %p922_p2 = pnand %p921_p0, %p920_p12  ;;  %p926_p6 = scmp.lt.u32.totalorder %s924_s4, %s919_s13 }
  0x5a   : > { %p928_p3 = scmp.lt.u32.totalorder %s919_s13, %s1239_s14 }
  0x5b   : > { %p923_p1 = pneg %p922_p2  ;;  %p927_p10 = por %p926_p6, %p925_p13 }
  0x5d   : > { %p929_p7 = por %p928_p3, %p927_p10 }
  0x5f   : > { %p930_p9 = pnand %p929_p7, %p923_p1 }
  0x61   : > { %933 = shalt.err (!%p930_p9)
}
  0x62   : > { %s934_s12 = scalar_lea.vmem %s1242_s16, 128  ;;  %s1063_s2 = smov [#allocation2]  }
  0x63   : > { %p935_p12 = scmp.ne.s32.totalorder %s1242_s16, %s934_s12  ;;  %s939_s19 = sshll.u32 %s1063_s2, 4  ;;  %s940_s19 = int_to_ptr.vmem [resolvable:$false] %s939_s19 }
  0x64   : > { %s941_s11 = scalar_lea.vmem %s940_s19, 256  ;;  %p942_p4 = scmp.lt.s32.totalorder %s1242_s16, %s940_s19 }
  0x65   : > { %p937_p2 = pnand %p935_p12, %p921_p0  ;;  %p943_p13 = scmp.lt.s32.totalorder %s941_s11, %s934_s12 }
  0x67   : > { %p938_p5 = pneg %p937_p2  ;;  %p944_p6 = por %p943_p13, %p942_p4 }
  0x69   : > { %p945_p10 = pnand %p944_p6, %p938_p5 }
  0x6b   : > { %948 = shalt.err (!%p945_p10)
}
  0x6c   : > { %810 = dma.hbm_to_vmem [thread:$0]  (!%p1244_p11), %s1239_s14, 128, %s1242_s16, %s239_s20  }
  0x6d   : > { %s260_s4 = scalar_lea.vmem [#allocation5], %s1233_s10  ;;  %s257_s13 = scalar_lea.sflag [#allocation6], %s256_s30 }
  0x6e   : > { %s267_s18 = sshll.u32 %s260_s4, 4  ;;  %s949_s15 = scalar_lea.hbm %s1251_s8, 128  ;;  %s268_s18 = int_to_ptr.vmem [resolvable:$true] %s267_s18 }
  0x6f   : > { %p950_p4 = scmp.ne.s32.totalorder %s1251_s8, %s949_s15  ;;  %s954_s2 = scalar_lea.hbm %s1399_s1, 256 }
  0x70   : > { %p955_p3 = scmp.lt.u32.totalorder %s1251_s8, %s1399_s1  ;;  %p956_p7 = scmp.lt.u32.totalorder %s954_s2, %s949_s15 }
  0x71   : > { %p952_p5 = pnand %p950_p4, %p921_p0  ;;  %p958_p12 = scmp.lt.u32.totalorder %s949_s15, %s1251_s8 }
  0x72   : > { %p957_p9 = por %p956_p7, %p955_p3 }
  0x73   : > { %p953_p1 = pneg %p952_p5 }
  0x74   : > { %p959_p2 = por %p958_p12, %p957_p9 }
  0x76   : > { %p960_p13 = pnand %p959_p2, %p953_p1 }
  0x78   : > { %963 = shalt.err (!%p960_p13)
}
  0x79   : > { %s964_s10 = scalar_lea.vmem %s268_s18, 128  ;;  %s1064_s14 = smov [#allocation5]  }
  0x7a   : > { %p965_p6 = scmp.ne.s32.totalorder %s268_s18, %s964_s10  ;;  %s969_s16 = sshll.u32 %s1064_s14, 4  ;;  %s970_s16 = int_to_ptr.vmem [resolvable:$false] %s969_s16 }
  0x7b   : > { %s971_s30 = scalar_lea.vmem %s970_s16, 256  ;;  %p972_p5 = scmp.lt.s32.totalorder %s268_s18, %s970_s16 }
  0x7c   : > { %p967_p10 = pnand %p965_p6, %p921_p0  ;;  %p973_p8 = scmp.lt.s32.totalorder %s971_s30, %s964_s10 }
  0x7e   : > { %p968_p4 = pneg %p967_p10  ;;  %p974_p3 = por %p973_p8, %p972_p5 }
  0x80   : > { %p975_p7 = pnand %p974_p3, %p968_p4 }
  0x82   : > { %978 = shalt.err (!%p975_p7)
}
  0x83   : > { %813 = dma.hbm_to_vmem [thread:$0]  (!%p1244_p11), %s1251_s8, 128, %s268_s18, %s257_s13  }
  0x84   : > { %p1421_p1 = scmp.ne.s32.totalorder %s1413_s29, 0 }
  0x85   : > { %s1304_s20 = sand.u32 (!%p1421_p1), 1, %s1049_s22   ;;  %p1422_p8 = scmp.ne.s32.totalorder (!%p1421_p1), %s1411_s27, 0 }
  0x86   : > { %276 = sbr.rel (%p1421_p1) target bundleno = 415 (0x19f), region = 44  ;;  %s656_s4 = sshll.u32 (!%p1421_p1), %s1304_s20, 3 }
  0x87   : > { %s279_s15 = scalar_lea.sflag (!%p1421_p1), [#allocation3], %s1304_s20  ;;  %s1308_s17 = scalar_lea.vmem (!%p1421_p1), [#allocation2], %s656_s4 }
  0x8d   : > { %1024 = dma.done.wait (%p1422_p8), %s279_s15, 128  }
  0x8e   : > { %1026 = vsyncadd (%p1422_p8), %s279_s15, 4294967168  ;;  %s287_s7 = sand.u32 1, %s1125_s25   ;;  %s1315_s8 = scalar_lea.vmem [#allocation5], %s656_s4 }
  0x8f   : > { %s288_s29 = scalar_lea.sflag [#allocation6], %s287_s7 }
  0x90   : > { %1028 = dma.done.wait (%p1422_p8), %s288_s29, 128  }
  0x91   : > { %1030 = vsyncadd (%p1422_p8), %s288_s29, 4294967168  ;;  %p1423_p11 = scmp.eq.s32.totalorder %s1125_s25, 0 }
  0x93   : > { %1032 = dma.done.wait (%p1423_p11), [#allocation6], 2048   ;;  %p1424_p0 = pmov %p1423_p11 }
  0x95   : > { %1034 = vsyncadd (%p1424_p0), [#allocation6], 4294965248  ;;  %p1425_p9 = pmov %p1424_p0 }
  0x96   : > { %p1426_p12 = pmov %p1424_p0 }
  0x97   : > { %1036 = dma.done.wait (%p1425_p9), [#allocation9], 1024  }
  0x98   : > { %1038 = vsyncadd (%p1426_p12), [#allocation9], 4294966272  ;;  %v1065_v0 = vmov 0.0|0.0   ;;  %vm1066_vm0 = vmmov 0   ;;  %v1067_v1 = vmov 0.0   ;;  %v335_v2 = vld [vmem:[#allocation7] sm:$0xff] }
  0x99   : > { %750 = vmatprep.subr.bf16.mxu0 %v1065_v0  ;;  %774 = vmatprep.subr.bf16.mxu1 %v1065_v0  ;;  %v336_v3 = vld [vmem:[#allocation7 + $0x8] sm:$0xff]  ;;  %v337_v4 = vld [vmem:[#allocation7 + $0x10] sm:$0xff]  ;;  %v338_v6 = vld [vmem:[#allocation7 + $0x18] sm:$0xff]  ;;  %vm443_vm1 = vcmask 523264   ;;  %s660_s27 = sshll.u32 %s1304_s20, 4  ;;  %s669_s11 = sshll.u32 %s1125_s25, 8 }
  0x9a   : > { %747 = vmatprep.mubr.msk.f32.mxu1 %vm1066_vm0, %v1067_v1  ;;  %728 = vmatprep.mubr.msk.f32.mxu0 %vm1066_vm0, %v1067_v1  ;;  %v751_v5 = vpack.c.bf16 %v336_v3, %v335_v2  ;;  %v428_v7 = vld [vmem:[#allocation8] sm:$0xff]  ;;  %v754_v8 = vpack.c.bf16 %v338_v6, %v337_v4  ;;  %v429_v10 = vld [vmem:[#allocation8 + $0x8] sm:$0xff]  ;;  %v430_v13 = vld [vmem:[#allocation8 + $0x10] sm:$0xff]  ;;  %s332_s12 = scalar_lea.vmem [#allocation10], %s660_s27  ;;  %s1354_s30 = scalar_lea.hbm %s1404_s6, %s669_s11 }
  0x9b   : > { %v339_v9 = vld [vmem:[#allocation7 + $0x20] sm:$0xff]  ;;  %v340_v11 = vld [vmem:[#allocation7 + $0x28] sm:$0xff]  ;;  %v775_v12 = vpack.c.bf16 %v429_v10, %v428_v7  ;;  %v431_v14 = vld [vmem:[#allocation8 + $0x18] sm:$0xff]  ;;  %s534_s10 = sshll.u32 %s332_s12, 4  ;;  %s520_s4 = scalar_lea.sflag [#allocation4], %s1304_s20  ;;  %s1356_s10 = int_to_ptr.vmem [resolvable:$true] %s534_s10 }
  0x9c   : > { %752 = vmatpush3.bf16.msra.mxu0 %v751_v5  ;;  %v778_v15 = vpack.c.bf16 %v431_v14, %v430_v13  ;;  %v757_v16 = vpack.c.bf16 %v340_v11, %v339_v9  ;;  %v432_v17 = vld [vmem:[#allocation8 + $0x20] sm:$0xff]  ;;  %v433_v18 = vld [vmem:[#allocation8 + $0x28] sm:$0xff]  ;;  %v341_v19 = vld [vmem:[#allocation7 + $0x30] sm:$0xff]  ;;  %s979_s15 = scalar_lea.vmem %s1356_s10, 256  ;;  %p1427_p13 = scmp.ne.s32.totalorder %s1418_s9, 0 }
  0x9d   : > { %753 = vmatprep.subr.bf16.mxu0 %v1065_v0  ;;  %776 = vmatpush3.bf16.msra.mxu1 %v775_v12  ;;  %v342_v20 = vld [vmem:[#allocation7 + $0x38] sm:$0xff]  ;;  %v781_v21 = vpack.c.bf16 %v433_v18, %v432_v17  ;;  %v434_v23 = vld [vmem:[#allocation8 + $0x30] sm:$0xff]  ;;  %v343_v25 = vld [vmem:[#allocation7 + $0x40] sm:$0xff]  ;;  %p980_p2 = scmp.ne.s32.totalorder %s1356_s10, %s979_s15  ;;  %s1068_s25 = smov [#allocation10]  }
  0x9e   : > { %777 = vmatprep.subr.bf16.mxu1 %v1065_v0  ;;  %v760_v22 = vpack.c.bf16 %v342_v20, %v341_v19  ;;  %v435_v24 = vld [vmem:[#allocation8 + $0x38] sm:$0xff]  ;;  %v344_v26 = vld [vmem:[#allocation7 + $0x48] sm:$0xff]  ;;  %v345_v29 = vld [vmem:[#allocation7 + $0x50] sm:$0xff] }
  0x9f   : > { %v784_v27 = vpack.c.bf16 %v435_v24, %v434_v23  ;;  %v763_v28 = vpack.c.bf16 %v344_v26, %v343_v25  ;;  %v346_v30 = vld [vmem:[#allocation7 + $0x58] sm:$0xff]  ;;  %v334_v31 = vld [vmem:[%s1308_s17] sm:$0xff]  ;;  %v349_v36 = vld [vmem:[#allocation7 + $0x70] sm:$0xff]  ;;  %p981_p6 = pnand %p980_p2, %p1427_p13  ;;  %s983_s17 = sshll.u32 %s1068_s25, 4  ;;  %s984_s17 = int_to_ptr.vmem [resolvable:$false] %s983_s17 }
  0xa0   : > { %755 = vmatpush3.bf16.msra.mxu0 %v754_v8  ;;  %v766_v32 = vpack.c.bf16 %v346_v30, %v345_v29  ;;  %v347_v33 = vld [vmem:[#allocation7 + $0x60] sm:$0xff]  ;;  %v348_v34 = vld [vmem:[#allocation7 + $0x68] sm:$0xff]  ;;  %v350_v37 = vld [vmem:[#allocation7 + $0x78] sm:$0xff]  ;;  %s985_s7 = scalar_lea.vmem %s984_s17, 512  ;;  %p986_p4 = scmp.lt.s32.totalorder %s1356_s10, %s984_s17 }
  0xa1   : > { %756 = vmatprep.subr.bf16.mxu0 %v1065_v0  ;;  %779 = vmatpush3.bf16.msra.mxu1 %v778_v15  ;;  %v769_v35 = vpack.c.bf16 %v348_v34, %v347_v33  ;;  %v772_v38 = vpack.c.bf16 %v350_v37, %v349_v36  ;;  %v333_v39 = vld [vmem:[%s1315_s8] sm:$0xff]  ;;  %v662_v40 = vld [vmem:[%s1403_s5] ss:$0 sm:$0xff]  ;;  %p982_p10 = pneg %p981_p6  ;;  %p987_p5 = scmp.lt.s32.totalorder %s985_s7, %s979_s15 }
  0xa2   : > { %780 = vmatprep.subr.bf16.mxu1 %v1065_v0  ;;  %v661_v44 = vld [vmem:[%s1401_s3] ss:$0 sm:$0xff] }
  0xa3   : > { %p988_p3 = por %p987_p5, %p986_p4 }
  0xa4   : > { %758 = vmatpush3.bf16.msra.mxu0 %v757_v16 }
  0xa5   : > { %759 = vmatprep.subr.bf16.mxu0 %v1065_v0  ;;  %782 = vmatpush3.bf16.msra.mxu1 %v781_v21  ;;  %p989_p7 = pnand %p988_p3, %p982_p10 }
  0xa6   : > { %783 = vmatprep.subr.bf16.mxu1 %v1065_v0 }
  0xa8   : > { %761 = vmatpush3.bf16.msra.mxu0 %v760_v22 }
  0xa9   : > { %762 = vmatprep.subr.bf16.mxu0 %v1065_v0  ;;  %785 = vmatpush3.bf16.msra.mxu1 %v784_v27 }
  0xac   : > { %764 = vmatpush3.bf16.msra.mxu0 %v763_v28  ;;  %748 = vmatmul.mubr.msk.f32.vlgmr.msra.gmra.mrb[0].mxu1 %vm443_vm1, %v334_v31 }
  0xad   : > { %765 = vmatprep.subr.bf16.mxu0 %v1065_v0 }
  0xb0   : > { %767 = vmatpush3.bf16.msra.mxu0 %v766_v32 }
  0xb1   : > { %768 = vmatprep.subr.bf16.mxu0 %v1065_v0 }
  0xb4   : > { %770 = vmatpush3.bf16.msra.mxu0 %v769_v35 }
  0xb5   : > { %771 = vmatprep.subr.bf16.mxu0 %v1065_v0 }
  0xb8   : > { %773 = vmatpush3.bf16.msra.mxu0 %v772_v38 }
  0xbb   : > { %729 = vmatmul.mubr.f32.vlgmr.msra.gmra.mrb[0].mxu0 %v333_v39 }
 0x17f   : > { %v513_v41 = vpop.f32.mrb[0].mxu1 }
 0x180   : > { %v514_v42 = vadd.f32 %v662_v40, %v513_v41  ;;  %v749_v43 = vpop.f32.mrb[1].mxu1 }
 0x182   : > { %518 = vst [vmem:[%s332_s12 + $0x8] sm:$0xff] %v514_v42 }
 0x18e   : > { %v424_v45 = vpop.f32.mrb[0].mxu0 }
 0x18f   : > { %v425_v46 = vadd.f32 %v661_v44, %v424_v45  ;;  %v730_v47 = vpop.f32.mrb[1].mxu0 }
 0x191   : > { %517 = vst [vmem:[%s332_s12] sm:$0xff] %v425_v46 }
 0x192   : > { %992 = shalt.err (!%p989_p7)
}
 0x193   : > { %s993_s20 = scalar_lea.hbm %s1354_s30, 256  ;;  %s997_s27 = scalar_lea.hbm %s1404_s6, 512 }
 0x194   : > { %p994_p1 = scmp.ne.s32.totalorder %s1354_s30, %s993_s20  ;;  %p998_p0 = scmp.lt.u32.totalorder %s1354_s30, %s1404_s6 }
 0x195   : > { %p999_p9 = scmp.lt.u32.totalorder %s997_s27, %s993_s20  ;;  %p1001_p2 = scmp.lt.u32.totalorder %s993_s20, %s1354_s30 }
 0x196   : > { %p995_p8 = pnand %p994_p1, %p1427_p13 }
 0x197   : > { %p1000_p12 = por %p999_p9, %p998_p0 }
 0x198   : > { %p996_p11 = pneg %p995_p8 }
 0x199   : > { %p1002_p6 = por %p1001_p2, %p1000_p12 }
 0x19b   : > { %p1003_p10 = pnand %p1002_p6, %p996_p11 }
 0x19d   : > { %1006 = shalt.err (!%p1003_p10)
}
 0x19e   : > { %798 = dma.vmem_to_hbm [thread:$0]  (%p1427_p13), %s1356_s10, 256, %s1354_s30, %s520_s4  }
 0x19f PF: > { %s546_s12 = sand.u32 1, %s1045_s21   ;;  %p1428_p4 = scmp.ne.s32.totalorder %s1412_s28, 0 }
 0x1a0   : > { %p1429_p5 = scmp.ge.s32.totalorder %s1057_s24, 2  ;;  %s547_s2 = scalar_lea.sflag [#allocation4], %s546_s12 }
 0x1a2   : > { %p815_p3 = pnand %p1429_p5, %p1428_p4 }
 0x1a4   : > { %1040 = dma.done.wait (!%p815_p3), %s547_s2, 256  }
 0x1a5   : > { %1042 = vsyncadd (!%p815_p3), %s547_s2, 4294967040  ;;  %s1430_s19 = sld [smem:[#allocation16_spill]]  ;;  %p23_p7 = scmp.ge.s32.totalorder %s1214_s26, 4  }
 0x1a6   : > { %s1431_s21 = smov %s1049_s22  ;;  %s1432_s22 = smov %s1053_s23 }
 0x1a7   : > { %s1434_s24 = smov %s1214_s26  ;;  %25 = sbr.rel (!%p23_p7) target bundleno = 11 (0xb), region = 110 }
 0x1ab   : > { %s1433_s23 = smov %s1430_s19 }
 0x1ae   :  { %552 = vsyncpa [#allocation3], 1 }
 0x1af   :  { %554 = vsyncpa [#allocation3 + $0x1], 1 }
 0x1b0   :  { %555 = vsyncpa [#allocation6], 1 }
 0x1b1   :  { %557 = vsyncpa [#allocation6 + $0x1], 1 }
 0x1b2   :  { %558 = vsyncpa [#allocation9], 1 }
 0x1b3   :  { %559 = vsyncpa [#allocation4], 1 }
 0x1b4   :  { %561 = vsyncpa [#allocation4 + $0x1], 1 }

</bundles_post_ra>
